<compile_context>
chip_gen: v7x
topology: tpu7x:2x2x1
jax: 0.10.0
libtpu: 0.0.40
codegen_flags: <defaults>
</compile_context>

<pallas_src>
import functools

import jax
import jax.numpy as jnp
from jax.experimental import pallas as pl
from jax.experimental.pallas import tpu as pltpu

LANES = 128
MAX_BLOCK_ROWS = 1024   # 1024 x 128 f32 = 512 KiB per input block
NUM_SPLITS = 2          # outer "parallel" grid axis (v7x has 2 TensorCores)


def _vfloss_kernel(pred_ref, true_ref, out_ref, *,
                   total_n, block_rows, tiles_per_split, alpha, gamma):
    c = pl.program_id(0)           # "parallel" split axis
    i = pl.program_id(1)           # reduction ("arbitrary") axis

    @pl.when(i == 0)
    def _():
        out_ref[...] = jnp.zeros_like(out_ref)

    x = pred_ref[...].astype(jnp.float32)
    y = true_ref[...].astype(jnp.float32)

    # One exp per element, shared by the BCE softplus term and the sigmoid.
    e = jnp.exp(-jnp.abs(x))                                   # EUP
    # BCEWithLogitsLoss(reduction='none'), numerically stable form.
    bce = jnp.maximum(x, 0.0) - x * y + jnp.log1p(e)
    one_plus_e = 1.0 + e
    p = jnp.where(x >= 0.0, 1.0 / one_plus_e, e / one_plus_e)  # sigmoid(x)

    t = jnp.abs(p - y)
    if gamma == 1.5:
        tg = t * jnp.sqrt(t)       # |p - y|**1.5 without pow/log
    elif gamma == 2.0:
        tg = t * t
    else:
        tg = jnp.power(t, gamma)

    pos = (y > 0.0).astype(jnp.float32)
    focal_weight = y * pos + alpha * tg * (1.0 - pos)
    loss = bce * focal_weight

    # Mask out the padded tail (element-granular; cheap VPU select).
    row_off = (c * tiles_per_split + i) * block_rows
    ridx = jax.lax.broadcasted_iota(jnp.int32, (block_rows, LANES), 0)
    lidx = jax.lax.broadcasted_iota(jnp.int32, (block_rows, LANES), 1)
    idx = (row_off + ridx) * LANES + lidx    # int32: fine for < 2^31 elements
    loss = jnp.where(idx < total_n, loss, 0.0)

    # vreg-shaped partial sum: sublane-folded adds only, no per-step
    # cross-lane reduce and no serialized scalar accumulator.
    out_ref[...] += loss.reshape(block_rows // 8, 8, LANES).sum(axis=0)


def _round_up(v, m):
    return (v + m - 1) // m * m


def vf_loss(pred, true, gamma=1.5, alpha=0.25, reduction="mean"):
    """Pallas-TPU VFLoss.forward (base loss = nn.BCEWithLogitsLoss)."""
    assert pred.shape == true.shape
    n = int(pred.size)
    assert n > 0

    rows = _round_up(n, LANES) // LANES
    block_rows = min(MAX_BLOCK_ROWS, _round_up(rows, 8))
    tiles = _round_up(rows, block_rows) // block_rows
    tiles_per_split = _round_up(tiles, NUM_SPLITS) // NUM_SPLITS
    padded_rows = NUM_SPLITS * tiles_per_split * block_rows
    padded_n = padded_rows * LANES

    def to_slab(a):
        flat = a.reshape(-1)
        if padded_n != n:
            flat = jnp.pad(flat, (0, padded_n - n))
        return flat.reshape(padded_rows, LANES)

    pred2d = to_slab(pred)   # original dtype preserved (f32/bf16/...); upcast in-kernel
    true2d = to_slab(true)

    kernel = functools.partial(
        _vfloss_kernel, total_n=n, block_rows=block_rows,
        tiles_per_split=tiles_per_split, alpha=float(alpha), gamma=float(gamma))

    partials = pl.pallas_call(
        kernel,
        out_shape=jax.ShapeDtypeStruct((NUM_SPLITS * 8, LANES), jnp.float32),
        grid_spec=pltpu.PrefetchScalarGridSpec(
            num_scalar_prefetch=0,
            grid=(NUM_SPLITS, tiles_per_split),
            in_specs=[
                pl.BlockSpec((block_rows, LANES),
                             lambda c, i: (c * tiles_per_split + i, 0)),
                pl.BlockSpec((block_rows, LANES),
                             lambda c, i: (c * tiles_per_split + i, 0)),
            ],
            out_specs=pl.BlockSpec((8, LANES), lambda c, i: (c, 0)),
        ),
        compiler_params=pltpu.CompilerParams(
            dimension_semantics=("parallel", "arbitrary"),
        ),
    )(pred2d, true2d)

    total = jnp.sum(partials)        # single cross-lane reduce, outside the kernel
    if reduction == "mean":
        return total / jnp.float32(n)
    elif reduction == "sum":
        return total
    else:
        # TODO(synk): reduction='none' (elementwise output) not implemented.
        raise NotImplementedError("reduction='none' is not supported")


def _reference(pred, true, gamma=1.5, alpha=0.25):
    """Pure-JAX reference of the intended VFLoss forward (mean reduction)."""
    x = pred.astype(jnp.float32)
    y = true.astype(jnp.float32)
    bce = jnp.maximum(x, 0.0) - x * y + jnp.log1p(jnp.exp(-jnp.abs(x)))
    p = jax.nn.sigmoid(x)
    w = (y * (y > 0.0).astype(jnp.float32)
         + alpha * jnp.abs(p - y) ** gamma * (y <= 0.0).astype(jnp.float32))
    return jnp.mean(bce * w)


if __name__ == "__main__":
    key = jax.random.PRNGKey(0)
    k1, k2, k3 = jax.random.split(key, 3)
    shape = (2, 4, 16, 16)                     # NCHW logits / targets
    pred = jax.random.normal(k1, shape, dtype=jnp.float32)
    # Varifocal-style targets: IoU-aware scores for positives, 0 for negatives.
    is_pos = jax.random.uniform(k2, shape) > 0.5
    true = jnp.where(is_pos, jax.random.uniform(k3, shape), 0.0).astype(jnp.float32)

    out = vf_loss(pred, true)
    out = jax.block_until_ready(out)

    ref = _reference(pred, true)
    assert jnp.allclose(out, ref, rtol=1e-5, atol=1e-6), (out, ref)
    print("KERNEL_OK")
</pallas_src>

<mosaic_0001>
module attributes {stable_mosaic.version = 11 : i64} {
  func.func @_vfloss_kernel(%arg0: i32, %arg1: i32, %arg2: memref<16x128xf32, #tpu.memory_space<vmem>>, %arg3: memref<16x128xf32, #tpu.memory_space<vmem>>, %arg4: memref<8x128xf32, #tpu.memory_space<vmem>>) attributes {dimension_semantics = [#tpu.dimension_semantics<parallel>, #tpu.dimension_semantics<arbitrary>], iteration_bounds = array<i64: 2, 1>, scalar_prefetch = 0 : i64, scratch_operands = 0 : i64, tpu.core_type = #tpu.core_type<tc>, window_params = [{transform_indices = @transform_0, window_bounds = array<i64: 16, 128>}, {transform_indices = @transform_1, window_bounds = array<i64: 16, 128>}, {transform_indices = @transform_2, window_bounds = array<i64: 8, 128>}]} {
    %c0_i32 = arith.constant 0 : i32
    %0 = arith.cmpi eq, %arg1, %c0_i32 : i32
    %1 = arith.extui %0 : i1 to i32
    %c0_i32_0 = arith.constant 0 : i32
    %2 = arith.cmpi ne, %1, %c0_i32_0 : i32
    scf.if %2 {
      %cst_17 = arith.constant 0.000000e+00 : f32
      %58 = vector.broadcast %cst_17 : f32 to vector<8x128xf32>
      %c0_18 = arith.constant 0 : index
      %c0_19 = arith.constant 0 : index
      %59 = vector.load %arg4[%c0_18, %c0_19] : memref<8x128xf32, #tpu.memory_space<vmem>>, vector<8x128xf32>
      tpu.vector_store %arg4[%c0_18, %c0_19], %58 {strides = array<i32>} : memref<8x128xf32, #tpu.memory_space<vmem>>, vector<8x128xf32>,
    } else {
    }
    %c0 = arith.constant 0 : index
    %c0_1 = arith.constant 0 : index
    %3 = vector.load %arg2[%c0, %c0_1] : memref<16x128xf32, #tpu.memory_space<vmem>>, vector<16x128xf32>
    %c0_2 = arith.constant 0 : index
    %c0_3 = arith.constant 0 : index
    %4 = vector.load %arg3[%c0_2, %c0_3] : memref<16x128xf32, #tpu.memory_space<vmem>>, vector<16x128xf32>
    %5 = math.absf %3 : vector<16x128xf32>
    %cst = arith.constant 0.000000e+00 : f32
    %6 = vector.broadcast %cst : f32 to vector<16x128xf32>
    %7 = arith.subf %6, %5 : vector<16x128xf32>
    %8 = math.exp %7 : vector<16x128xf32>
    %cst_4 = arith.constant 0.000000e+00 : f32
    %9 = vector.broadcast %cst_4 : f32 to vector<16x128xf32>
    %10 = arith.maximumf %3, %9 : vector<16x128xf32>
    %11 = arith.mulf %3, %4 : vector<16x128xf32>
    %12 = arith.subf %10, %11 : vector<16x128xf32>
    %13 = math.log1p %8 : vector<16x128xf32>
    %14 = arith.addf %12, %13 : vector<16x128xf32>
    %cst_5 = arith.constant 1.000000e+00 : f32
    %15 = vector.broadcast %cst_5 : f32 to vector<16x128xf32>
    %16 = arith.addf %15, %8 : vector<16x128xf32>
    %cst_6 = arith.constant 0.000000e+00 : f32
    %17 = vector.broadcast %cst_6 : f32 to vector<16x128xf32>
    %18 = arith.cmpf oge, %3, %17 : vector<16x128xf32>
    %cst_7 = arith.constant 1.000000e+00 : f32
    %19 = vector.broadcast %cst_7 : f32 to vector<16x128xf32>
    %20 = arith.divf %19, %16 : vector<16x128xf32>
    %21 = arith.divf %8, %16 : vector<16x128xf32>
    %22 = arith.select %18, %20, %21 : vector<16x128xi1>, vector<16x128xf32>
    %23 = arith.subf %22, %4 : vector<16x128xf32>
    %24 = math.absf %23 : vector<16x128xf32>
    %25 = math.sqrt %24 : vector<16x128xf32>
    %26 = arith.mulf %24, %25 : vector<16x128xf32>
    %cst_8 = arith.constant 0.000000e+00 : f32
    %27 = vector.broadcast %cst_8 : f32 to vector<16x128xf32>
    %28 = arith.cmpf ogt, %4, %27 : vector<16x128xf32>
    %29 = arith.extui %28 : vector<16x128xi1> to vector<16x128xi32>
    %30 = arith.sitofp %29 : vector<16x128xi32> to vector<16x128xf32>
    %31 = arith.mulf %4, %30 : vector<16x128xf32>
    %cst_9 = arith.constant 2.500000e-01 : f32
    %32 = vector.broadcast %cst_9 : f32 to vector<16x128xf32>
    %33 = arith.mulf %32, %26 : vector<16x128xf32>
    %cst_10 = arith.constant 1.000000e+00 : f32
    %34 = vector.broadcast %cst_10 : f32 to vector<16x128xf32>
    %35 = arith.subf %34, %30 : vector<16x128xf32>
    %36 = arith.mulf %33, %35 : vector<16x128xf32>
    %37 = arith.addf %31, %36 : vector<16x128xf32>
    %38 = arith.mulf %14, %37 : vector<16x128xf32>
    %c1_i32 = arith.constant 1 : i32
    %39 = arith.muli %arg0, %c1_i32 : i32
    %40 = arith.addi %39, %arg1 : i32
    %c16_i32 = arith.constant 16 : i32
    %41 = arith.muli %40, %c16_i32 : i32
    %42 = tpu.iota {dimensions = array<i32: 0>} : vector<16x128xi32>
    %43 = tpu.iota {dimensions = array<i32: 1>} : vector<16x128xi32>
    %44 = vector.broadcast %41 : i32 to vector<16x128xi32>
    %45 = arith.addi %44, %42 : vector<16x128xi32>
    %c128_i32 = arith.constant 128 : i32
    %46 = vector.broadcast %c128_i32 : i32 to vector<16x128xi32>
    %47 = arith.muli %45, %46 : vector<16x128xi32>
    %48 = arith.addi %47, %43 : vector<16x128xi32>
    %c2048_i32 = arith.constant 2048 : i32
    %49 = vector.broadcast %c2048_i32 : i32 to vector<16x128xi32>
    %50 = arith.cmpi slt, %48, %49 : vector<16x128xi32>
    %cst_11 = arith.constant 0.000000e+00 : f32
    %51 = vector.broadcast %cst_11 : f32 to vector<16x128xf32>
    %52 = arith.select %50, %38, %51 : vector<16x128xi1>, vector<16x128xf32>
    %c0_12 = arith.constant 0 : index
    %c0_13 = arith.constant 0 : index
    %53 = vector.load %arg4[%c0_12, %c0_13] : memref<8x128xf32, #tpu.memory_space<vmem>>, vector<8x128xf32>
    %54 = vector.shape_cast %52 : vector<16x128xf32> to vector<2x8x128xf32>
    %cst_14 = arith.constant dense<0.000000e+00> : vector<8x128xf32>
    %55 = vector.multi_reduction <add>, %54, %cst_14 [0] : vector<2x8x128xf32> to vector<8x128xf32>
    %56 = arith.addf %53, %55 : vector<8x128xf32>
    %c0_15 = arith.constant 0 : index
    %c0_16 = arith.constant 0 : index
    %57 = vector.load %arg4[%c0_15, %c0_16] : memref<8x128xf32, #tpu.memory_space<vmem>>, vector<8x128xf32>
    tpu.vector_store %arg4[%c0_15, %c0_16], %56 {strides = array<i32>} : memref<8x128xf32, #tpu.memory_space<vmem>>, vector<8x128xf32>,
    return
  }
  func.func @transform_0(%arg0: i32, %arg1: i32) -> (i32, i32) {
    %c1_i32 = arith.constant 1 : i32
    %0 = arith.muli %arg0, %c1_i32 : i32
    %1 = arith.addi %0, %arg1 : i32
    %c0_i32 = arith.constant 0 : i32
    %c0_i32_0 = arith.constant 0 : i32
    return %1, %c0_i32 : i32, i32
  }
  func.func @transform_1(%arg0: i32, %arg1: i32) -> (i32, i32) {
    %c1_i32 = arith.constant 1 : i32
    %0 = arith.muli %arg0, %c1_i32 : i32
    %1 = arith.addi %0, %arg1 : i32
    %c0_i32 = arith.constant 0 : i32
    %c0_i32_0 = arith.constant 0 : i32
    return %1, %c0_i32 : i32, i32
  }
  func.func @transform_2(%arg0: i32, %arg1: i32) -> (i32, i32) {
    %c0_i32 = arith.constant 0 : i32
    %c0_i32_0 = arith.constant 0 : i32
    return %arg0, %c0_i32 : i32, i32
  }
}

</mosaic_0001>

<bundles_post_ra>
// kernel: tpu_custom_call.1
= control target key start
LH: loop header
LB: loop body
LE: loop exit
PB: predicated region body
PF: predicated region fallthrough
CT: control target
= control target key end

     0   :  { %7 = vsyncpa [#allocation3], 0  ;;  %s1015_s0 = inlined_call_operand.hbm [shape: f32[32,128], index: 0, kind: input, shape index: {}]   ;;  %s1016_s1 = inlined_call_operand.hbm [shape: f32[32,128], index: 1, kind: input, shape index: {}]   ;;  %s1017_s2 = inlined_call_operand.hbm [shape: f32[16,128], index: 2, kind: output, shape index: {}]  }
   0x1   :  { %9 = vsyncpa [#allocation3 + $0x1], 0 }
   0x2   :  { %10 = vsyncpa [#allocation6], 0 }
   0x3   :  { %12 = vsyncpa [#allocation6 + $0x1], 0 }
   0x4   :  { %13 = vsyncpa [#allocation4], 0 }
   0x5   :  { %15 = vsyncpa [#allocation4 + $0x1], 0  ;;  %s734_s9 = smov 0   ;;  %s736_s10 = smov 0  }
   0x6   :  { %s738_s11 = smov 0   ;;  %s740_s12 = smov 0  }
   0x7   :  { %s742_s13 = smov 0   ;;  %s744_s14 = smov 0  }
   0x8 LB: > { %s456_s15 = sadd.s32 4294967295, %s711_s14   ;;  %s457_s16 = sadd.s32 4294967294, %s711_s14   ;;  %s711_s14 = sphi %s744_s14, %s21_s14   ;;  %s707_s13 = sphi %s742_s13, %s1039_s13   ;;  %s703_s12 = sphi %s740_s12, %s1038_s12   ;;  %s699_s11 = sphi %s738_s11, %s1037_s11   ;;  %s695_s10 = sphi %s736_s10, %s1036_s10   ;;  %s691_s9 = sphi %s734_s9, %s1035_s9  }
   0x9   : > { %s33_s17 = sadd.s32 1, %s707_s13  ;;  %s42_s18 = sadd.s32 1, %s699_s11 }
   0xa   : > { %p35_p0 = scmp.ge.s32.totalorder %s33_s17, 2  ;;  %p49_p1 = scmp.ne.s32.totalorder %s699_s11, %s695_s10 }
   0xb   : > { %p50_p2 = scmp.eq.s32.totalorder %s711_s14, 0  ;;  %p55_p3 = scmp.ne.s32.totalorder %s695_s10, %s691_s9 }
   0xc   : > { %s1041_s17 = smov (%p35_p0, %s33_s17), 0  ;;  %p56_p5 = scmp.eq.s32.totalorder %s456_s15, 0 }
   0xd   : > { %p775_p4 = por %p50_p2, %p49_p1  ;;  %s39_s20 = ssub.s32 %s707_s13, %s1041_s17 }
   0xe   : > { %p107_p6 = scmp.eq.s32.totalorder %s456_s15, 1  ;;  %p40_p7 = scmp.eq.s32.totalorder %s39_s20, 0 }
   0xf   : > { %p781_p8 = por %p56_p5, %p55_p3  ;;  %p113_p10 = scmp.eq.s32.totalorder %s457_s16, 1 }
  0x10   : > { %p785_p9 = por %p107_p6, %p49_p1  ;;  %p496_p13 = scmp.lt.s32.totalorder %s711_s14, 2 }
  0x11   : > { %s1021_s21 = scalar_select %p781_p8, 1, 0 }
  0x12   : > { %s1022_s22 = scalar_select %p785_p9, 1, 0 }
  0x13   : > { %s790_s23 = scalar_select %p40_p7, %s699_s11, %s42_s18  }
  0x14   : > { %p792_p11 = por %p113_p10, %p55_p3  ;;  %s799_s25 = sand.u32 1, %s699_s11  }
  0x15   : > { %s460_s26 = sshll.u32 %s799_s25, 4  ;;  %s477_s27 = sshll.u32 %s707_s13, 8 }
  0x16   : > { %s1023_s24 = scalar_select %p792_p11, 1, 0 }
  0x17   : > { %s808_s30 = scalar_lea.hbm %s1015_s0, %s477_s27  ;;  %s137_s3 = scalar_lea.vmem [#allocation2], %s460_s26 }
  0x18   : > { %s145_s4 = sshll.u32 %s137_s3, 4  ;;  %p816_p0 = pnand %p496_p13, %p775_p4  ;;  %s812_s4 = int_to_ptr.vmem [resolvable:$true] %s145_s4 }
  0x19   : > { %s134_s6 = scalar_lea.sflag [#allocation3], %s799_s25  ;;  %s565_s7 = scalar_lea.hbm %s808_s30, 256 }
  0x1a   : > { %p566_p2 = scmp.ne.s32.totalorder %s808_s30, %s565_s7  ;;  %p567_p3 = pneg %p816_p0 }
  0x1b   : > { %s570_s16 = scalar_lea.hbm %s1015_s0, 512  ;;  %p571_p4 = scmp.lt.u32.totalorder %s808_s30, %s1015_s0 }
  0x1c   : > { %p568_p5 = pnand %p567_p3, %p566_p2  ;;  %p572_p7 = scmp.lt.u32.totalorder %s570_s16, %s565_s7 }
  0x1d   : > { %p574_p13 = scmp.lt.u32.totalorder %s565_s7, %s808_s30 }
  0x1e   : > { %p569_p6 = pneg %p568_p5  ;;  %p573_p10 = por %p572_p7, %p571_p4 }
  0x20   : > { %p575_p12 = por %p574_p13, %p573_p10 }
  0x22   : > { %p576_p1 = pnand %p575_p12, %p569_p6 }
  0x24   : > { %579 = shalt.err (!%p576_p1)
}
  0x25   : > { %s580_s20 = scalar_lea.vmem %s812_s4, 256  ;;  %s713_s28 = smov [#allocation2]  }
  0x26   : > { %p581_p2 = scmp.ne.s32.totalorder %s812_s4, %s580_s20  ;;  %s585_s29 = sshll.u32 %s713_s28, 4  ;;  %s586_s29 = int_to_ptr.vmem [resolvable:$false] %s585_s29 }
  0x27   : > { %s587_s3 = scalar_lea.vmem %s586_s29, 512  ;;  %p588_p9 = scmp.lt.s32.totalorder %s812_s4, %s586_s29 }
  0x28   : > { %p583_p5 = pnand %p581_p2, %p567_p3  ;;  %p589_p4 = scmp.lt.s32.totalorder %s587_s3, %s580_s20 }
  0x2a   : > { %p584_p11 = pneg %p583_p5  ;;  %p590_p7 = por %p589_p4, %p588_p9 }
  0x2c   : > { %p591_p10 = pnand %p590_p7, %p584_p11 }
  0x2e   : > { %594 = shalt.err (!%p591_p10)
}
  0x2f   : > { %s714_s7 = smov 128   ;;  %s715_s8 = smov 8  }
  0x30   : > { %488 = dma.hbm_to_vmem [thread:$0]  (!%p816_p0), %s808_s30, 256, %s812_s4, %s134_s6, %s714_s7, %s714_s7, %s715_s8  }
  0x31   : > { %p175_p9 = scmp.lt.s32.totalorder %s711_s14, 3  ;;  %s858_s18 = scalar_lea.hbm %s1016_s1, %s477_s27 }
  0x32   : > { %p1025_p11 = scmp.ge.s32.totalorder %s711_s14, 1  ;;  %s159_s20 = scalar_lea.vmem [#allocation5], %s460_s26 }
  0x33   : > { %s167_s28 = sshll.u32 %s159_s20, 4  ;;  %s156_s30 = scalar_lea.sflag [#allocation6], %s799_s25  ;;  %s868_s28 = int_to_ptr.vmem [resolvable:$true] %s167_s28 }
  0x34   : > { %p862_p12 = pnand %p1025_p11, %p175_p9  ;;  %s595_s4 = scalar_lea.hbm %s858_s18, 256 }
  0x35   : > { %p596_p1 = scmp.ne.s32.totalorder %s858_s18, %s595_s4  ;;  %s600_s29 = scalar_lea.hbm %s1016_s1, 512 }
  0x36   : > { %p601_p2 = scmp.lt.u32.totalorder %s858_s18, %s1016_s1  ;;  %p602_p5 = scmp.lt.u32.totalorder %s600_s29, %s595_s4 }
  0x37   : > { %p598_p6 = pnand %p596_p1, %p567_p3  ;;  %p604_p7 = scmp.lt.u32.totalorder %s595_s4, %s858_s18 }
  0x38   : > { %p603_p4 = por %p602_p5, %p601_p2 }
  0x39   : > { %p599_p13 = pneg %p598_p6 }
  0x3a   : > { %p605_p10 = por %p604_p7, %p603_p4 }
  0x3c   : > { %p606_p9 = pnand %p605_p10, %p599_p13 }
  0x3e   : > { %609 = shalt.err (!%p606_p9)
}
  0x3f   : > { %s610_s26 = scalar_lea.vmem %s868_s28, 256  ;;  %s716_s16 = smov [#allocation5]  }
  0x40   : > { %p611_p11 = scmp.ne.s32.totalorder %s868_s28, %s610_s26  ;;  %s615_s20 = sshll.u32 %s716_s16, 4  ;;  %s616_s20 = int_to_ptr.vmem [resolvable:$false] %s615_s20 }
  0x41   : > { %s617_s27 = scalar_lea.vmem %s616_s20, 512  ;;  %p618_p8 = scmp.lt.s32.totalorder %s868_s28, %s616_s20 }
  0x42   : > { %p613_p1 = pnand %p611_p11, %p567_p3  ;;  %p619_p2 = scmp.lt.s32.totalorder %s617_s27, %s610_s26 }
  0x44   : > { %p614_p6 = pneg %p613_p1  ;;  %p620_p5 = por %p619_p2, %p618_p8 }
  0x46   : > { %p621_p4 = pnand %p620_p5, %p614_p6 }
  0x48   : > { %624 = shalt.err (!%p621_p4)
}
  0x49   : > { %491 = dma.hbm_to_vmem [thread:$0]  (!%p816_p0), %s858_s18, 256, %s868_s28, %s156_s30, %s714_s7, %s714_s7, %s715_s8  }
  0x4a   : > { %179 = sbr.rel (%p862_p12) target bundleno = 165 (0xa5), region = 28  ;;  %s902_s4 = sand.u32 (!%p862_p12), 1, %s695_s10  }
  0x4b   : > { %s467_s6 = sshll.u32 (!%p862_p12), %s902_s4, 4  ;;  %s182_s29 = scalar_lea.sflag (!%p862_p12), [#allocation3], %s902_s4 }
  0x4c   : > { %s185_s5 = scalar_lea.vmem (!%p862_p12), [#allocation2], %s467_s6  ;;  %p1027_p8 = scmp.ne.s32.totalorder (!%p862_p12), %s1021_s21, 0 }
  0x51   : > { %678 = dma.done.wait (%p1027_p8), %s182_s29, 256  }
  0x52   : > { %680 = vsyncadd (%p1027_p8), %s182_s29, 4294967040  ;;  %s191_s25 = scalar_lea.sflag [#allocation6], %s902_s4  ;;  %s194_s7 = scalar_lea.vmem [#allocation5], %s467_s6 }
  0x53   : > { %682 = dma.done.wait (%p1027_p8), %s191_s25, 256  }
  0x54   : > { %684 = vsyncadd (%p1027_p8), %s191_s25, 4294967040  ;;  %v915_v0 = vld [vmem:[%s185_s5] sm:$0xff]  ;;  %v917_v1 = vld [vmem:[%s185_s5 + $0x8] sm:$0xff]  ;;  %v319_v19 = vlaneseq  ;;  %s472_s21 = sshll.u32 %s703_s12, 4  ;;  %v717_v43 = vmov 0.0   ;;  %s469_s8 = sshll.u32 %s902_s4, 3 }
  0x55   : > { %v233_v2 = vand.u32 2147483647, %v915_v0  ;;  %v234_v3 = vand.u32 2147483647, %v917_v1  ;;  %vm269_vm0 = vcmp.ge.f32.partialorder %v915_v0, 0.0  ;;  %v925_v14 = vld [vmem:[%s194_s7] sm:$0xff]  ;;  %v324_v26 = vstv %s472_s21 }
  0x56   : > { %vm270_vm1 = vcmp.ge.f32.partialorder %v917_v1, 0.0  ;;  %v928_v16 = vld [vmem:[%s194_s7 + $0x8] sm:$0xff]  ;;  %v320_v25 = vshrl.u32 %v319_v19, 7  ;;  %vm299_vm2 = vcmp.gt.f32.partialorder %v925_v14, 0.0  ;;  %v323_v31 = vand.u32 127, %v319_v19  ;;  %s474_s18 = sshll.u32 %s703_s12, 7 }
  0x57   : > { %v235_v4 = vsub.f32 0.0, %v233_v2  ;;  %v236_v5 = vsub.f32 0.0, %v234_v3  ;;  %vm300_vm3 = vcmp.gt.f32.partialorder %v928_v16, 0.0  ;;  %v241_v35 = vmax.f32 %v915_v0, 0.0  ;;  %s219_s19 = scalar_lea.vmem [#allocation7], %s469_s8  ;;  %s966_s15 = scalar_lea.hbm %s1017_s2, %s474_s18 }
  0x58   : > { %v321_v27 = vadd.s32 8, %v320_v25  ;;  %v325_v28 = vadd.s32 %v324_v26, %v320_v25  ;;  %v242_v36 = vmax.f32 %v917_v1, 0.0  ;;  %v243_v37 = vmul.f32 %v925_v14, %v915_v0  ;;  %s353_s28 = sshll.u32 %s219_s19, 4  ;;  %s340_s26 = scalar_lea.sflag [#allocation4], %s902_s4  ;;  %s968_s28 = int_to_ptr.vmem [resolvable:$true] %s353_s28 }
  0x59   : > { %v237_v6 = vmul.f32 1.442695, %v235_v4  ;;  %v239_v7 = vmul.f32 1.442695, %v236_v5  ;;  %v244_v40 = vmul.f32 %v928_v16, %v917_v1  ;;  %v470_v44 = vsel %vm299_vm2, 1.0, %v717_v43  ;;  %s625_s16 = scalar_lea.vmem %s968_s28, 128 }
  0x5a   : > { %v326_v32 = vadd.s32 %v324_v26, %v321_v27  ;;  %v327_v33 = vmul.u32 128, %v325_v28  ;;  %v471_v48 = vsel %vm300_vm3, 1.0, %v717_v43  ;;  %v245_v59 = vsub.f32 %v241_v35, %v243_v37  ;;  %p626_p0 = scmp.ne.s32.totalorder %s968_s28, %s625_s16  ;;  %p1032_p3 = scmp.ne.s32.totalorder %s1022_s22, 0 }
  0x5b   : > { %549 = vpow2.f32 %v237_v6  ;;  %v309_v1 = vsub.f32 1.0, %v470_v44  ;;  %v246_v3 = vsub.f32 %v242_v36, %v244_v40  ;;  %v310_v6 = vsub.f32 1.0, %v471_v48  ;;  %s718_s12 = smov [#allocation7]  }
  0x5c   : > { %551 = vpow2.f32 %v239_v7  ;;  %v328_v2 = vmul.u32 128, %v326_v32  ;;  %p627_p12 = pnand %p626_p0, %p1032_p3  ;;  %s629_s20 = sshll.u32 %s718_s12, 4  ;;  %s630_s20 = int_to_ptr.vmem [resolvable:$false] %s629_s20 }
  0x5d   : > { %s631_s27 = scalar_lea.vmem %s630_s20, 256  ;;  %p632_p7 = scmp.lt.s32.totalorder %s968_s28, %s630_s20 }
  0x5e   : > { %p628_p13 = pneg %p627_p12  ;;  %p633_p10 = scmp.lt.s32.totalorder %s631_s27, %s625_s16 }
  0x60   : > { %p634_p9 = por %p633_p10, %p632_p7 }
  0x62   : > { %p635_p11 = pnand %p634_p9, %p628_p13 }
  0x65   : > { %v550_v8 = vpop.eup %549 }
  0x66   : > { %v921_v9 = vpop.eup %551  ;;  %v247_v10 = vadd.f32 1.0, %v550_v8  ;;  %v250_v29 = vmul.f32 -0.5, %v550_v8  ;;  %v253_v41 = vand.u32 2147483647, %v550_v8 }
  0x67   : > { %v256_v11 = vadd.f32 1.0, %v921_v9  ;;  %v259_v30 = vmul.f32 -0.5, %v921_v9  ;;  %v262_v46 = vand.u32 2147483647, %v921_v9 }
  0x68   : > { %553 = vrcp.f32 %v247_v10  ;;  %v251_v38 = vadd.f32 1.0, %v250_v29  ;;  %vm946_vm8 = vcmp.lt.f32.partialorder %v253_v41, 0.0004427343 }
  0x69   : > { %555 = vrcp.f32 %v256_v11  ;;  %v260_v42 = vadd.f32 1.0, %v259_v30  ;;  %vm951_vm9 = vcmp.lt.f32.partialorder %v262_v46, 0.0004427343 }
  0x6a   : > { %557 = vlog2.f32 %v247_v10  ;;  %v252_v53 = vmul.f32 %v550_v8, %v251_v38  ;;  %v306_v10 = vmul.f32 %v471_v48, %v928_v16 }
  0x6b   : > { %559 = vlog2.f32 %v256_v11  ;;  %v261_v57 = vmul.f32 %v921_v9, %v260_v42 }
  0x72   : > { %v554_v12 = vpop.eup %553 }
  0x73   : > { %v556_v13 = vpop.eup %555  ;;  %v275_v15 = vmul.f32 %v554_v12, %v550_v8  ;;  %v305_v8 = vmul.f32 %v470_v44, %v925_v14 }
  0x74   : > { %v276_v17 = vmul.f32 %v556_v13, %v921_v9  ;;  %v558_v34 = vpop.eup %557 }
  0x75   : > { %v277_v18 = vsel %vm269_vm0, %v554_v12, %v275_v15  ;;  %v560_v39 = vpop.eup %559  ;;  %v249_v52 = vmul.f32 0.6931472, %v558_v34  ;;  %v329_v12 = vadd.s32 %v327_v33, %v323_v31 }
  0x76   : > { %v278_v20 = vsel %vm270_vm1, %v556_v13, %v276_v17  ;;  %v279_v21 = vsub.f32 %v277_v18, %v925_v14  ;;  %v258_v56 = vmul.f32 0.6931472, %v560_v39  ;;  %v330_v17 = vadd.s32 %v328_v2, %v323_v31 }
  0x77   : > { %v280_v22 = vsub.f32 %v278_v20, %v928_v16  ;;  %v255_v4 = vsel %vm946_vm8, %v252_v53, %v249_v52  ;;  %vm331_vm10 = vcmp.lt.s32.totalorder %v329_v12, 2048 }
  0x78   : > { %v281_v23 = vand.u32 2147483647, %v279_v21  ;;  %v264_v7 = vsel %vm951_vm9, %v261_v57, %v258_v56  ;;  %v265_v13 = vadd.f32 %v255_v4, %v245_v59  ;;  %vm332_vm11 = vcmp.lt.s32.totalorder %v330_v17, 2048 }
  0x79   : > { %v282_v24 = vand.u32 2147483647, %v280_v22  ;;  %v266_v18 = vadd.f32 %v264_v7, %v246_v3 }
  0x7a   : > { %561 = vrsqrt.f32 %v281_v23  ;;  %vm285_vm4 = vcmp.eq.f32.partialorder %v281_v23, inf  ;;  %v288_v47 = vand.u32 2147483648, %v281_v23  ;;  %vm287_vm5 = vcmp.eq.f32.partialorder %v281_v23, 0.0 }
  0x7b   : > { %563 = vrsqrt.f32 %v282_v24  ;;  %vm292_vm6 = vcmp.eq.f32.partialorder %v282_v24, inf  ;;  %v295_v51 = vand.u32 2147483648, %v282_v24  ;;  %vm294_vm7 = vcmp.eq.f32.partialorder %v282_v24, 0.0 }
  0x84   : > { %v562_v45 = vpop.eup %561 }
  0x85   : > { %v564_v49 = vpop.eup %563  ;;  %v284_v50 = vmul.f32 %v562_v45, %v281_v23 }
  0x86   : > { %v291_v54 = vmul.f32 %v564_v49, %v282_v24 }
  0x87   : > { %v286_v58 = vsel %vm285_vm4, %v281_v23, %v284_v50 }
  0x88   : > { %v289_v61 = vsel %vm287_vm5, %v288_v47, %v286_v58  ;;  %v293_v62 = vsel %vm292_vm6, %v282_v24, %v291_v54 }
  0x89   : > { %v296_v63 = vsel %vm294_vm7, %v295_v51, %v293_v62  ;;  %v297_v0 = vmul.f32 %v289_v61, %v281_v23 }
  0x8a   : > { %v298_v5 = vmul.f32 %v296_v63, %v282_v24 }
  0x8b   : > { %v307_v9 = vmul.f32 0.25, %v297_v0 }
  0x8c   : > { %v308_v11 = vmul.f32 0.25, %v298_v5 }
  0x8d   : > { %v311_v15 = vmul.f32 %v309_v1, %v307_v9 }
  0x8e   : > { %v312_v19 = vmul.f32 %v310_v6, %v308_v11 }
  0x8f   : > { %v313_v20 = vadd.f32 %v311_v15, %v305_v8 }
  0x90   : > { %v314_v21 = vadd.f32 %v312_v19, %v306_v10 }
  0x91   : > { %v315_v22 = vmul.f32 %v313_v20, %v265_v13 }
  0x92   : > { %v316_v14 = vmul.f32 %v314_v21, %v266_v18 }
  0x93   : > { %v333_v23 = vsel %vm331_vm10, %v315_v22, 0.0 }
  0x94   : > { %v334_v24 = vsel %vm332_vm11, %v316_v14, 0.0 }
  0x95   : > { %v336_v16 = vadd.f32 %v334_v24, %v333_v23 }
  0x97   : > { %338 = vst [vmem:[%s219_s19] sm:$0xff] %v336_v16 }
  0x98   : > { %638 = shalt.err (!%p635_p11)
}
  0x99   : > { %s639_s4 = scalar_lea.hbm %s966_s15, 128  ;;  %s643_s5 = scalar_lea.hbm %s1017_s2, 256 }
  0x9a   : > { %p640_p1 = scmp.ne.s32.totalorder %s966_s15, %s639_s4  ;;  %p644_p5 = scmp.lt.u32.totalorder %s966_s15, %s1017_s2 }
  0x9b   : > { %p645_p4 = scmp.lt.u32.totalorder %s643_s5, %s639_s4  ;;  %p647_p0 = scmp.lt.u32.totalorder %s639_s4, %s966_s15 }
  0x9c   : > { %p641_p6 = pnand %p640_p1, %p1032_p3 }
  0x9d   : > { %p646_p8 = por %p645_p4, %p644_p5 }
  0x9e   : > { %p642_p2 = pneg %p641_p6 }
  0x9f   : > { %p648_p12 = por %p647_p0, %p646_p8 }
  0xa1   : > { %p649_p13 = pnand %p648_p12, %p642_p2 }
  0xa3   : > { %652 = shalt.err (!%p649_p13)
}
  0xa4   : > { %483 = dma.vmem_to_hbm [thread:$0]  (%p1032_p3), %s968_s28, 128, %s966_s15, %s340_s26  }
  0xa5 PF: > { %s365_s21 = sand.u32 1, %s691_s9   ;;  %p1033_p7 = scmp.ne.s32.totalorder %s1023_s24, 0 }
  0xa6   : > { %p1034_p10 = scmp.ge.s32.totalorder %s711_s14, 2  ;;  %s366_s8 = scalar_lea.sflag [#allocation4], %s365_s21 }
  0xa8   : > { %p493_p9 = pnand %p1034_p10, %p1033_p7 }
  0xaa   : > { %686 = dma.done.wait (!%p493_p9), %s366_s8, 128  }
  0xab   : > { %688 = vsyncadd (!%p493_p9), %s366_s8, 4294967168  ;;  %s21_s14 = sadd.s32 1, %s711_s14   ;;  %s1035_s9 = smov %s695_s10 }
  0xac   : > { %p18_p11 = scmp.ge.s32.totalorder %s21_s14, 4   ;;  %s1036_s10 = smov %s699_s11 }
  0xad   : > { %s1037_s11 = smov %s790_s23  ;;  %s1038_s12 = smov %s707_s13 }
  0xae   : > { %s1039_s13 = smov %s1041_s17  ;;  %20 = sbr.rel (!%p18_p11) target bundleno = 8 (0x8), region = 90 }
  0xb5   :  { %371 = vsyncpa [#allocation3], 1 }
  0xb6   :  { %373 = vsyncpa [#allocation3 + $0x1], 1 }
  0xb7   :  { %374 = vsyncpa [#allocation6], 1 }
  0xb8   :  { %376 = vsyncpa [#allocation6 + $0x1], 1 }
  0xb9   :  { %377 = vsyncpa [#allocation4], 1 }
  0xba   :  { %379 = vsyncpa [#allocation4 + $0x1], 1 }

</bundles_post_ra>
